<compile_context>
chip_gen: v7x
topology: tpu7x:2x2x1
jax: 0.10.0
libtpu: 0.0.40
codegen_flags: <defaults>
</compile_context>

<pallas_src>
import jax
import jax.numpy as jnp
from jax.experimental import pallas as pl
from jax.experimental.pallas import tpu as pltpu


# ----------------------------------------------------------------------------
# Pallas kernel
# ----------------------------------------------------------------------------
def _copy_kernel(x_ref, o_ref):
    o_ref[...] = x_ref[...]


_LANE = 128
_MAX_BLOCK_ROWS = 2048        # 2048 x 128 x 4B = 1 MiB per buffer


def _pallas_identity(x):
    """Identity on a single array via a lane-dense Pallas copy kernel."""
    x = jnp.asarray(x)
    if x.size == 0:
        return x
    orig_shape = x.shape
    flat = x.reshape(-1)
    n = flat.shape[0]

    if n % _LANE == 0:
        rows, cols = n // _LANE, _LANE        # lane-dense: unmasked full vst
    else:
        rows, cols = 1, n                     # full-extent block (8,128 waived)
    mat = flat.reshape(rows, cols)

    if rows <= _MAX_BLOCK_ROWS:
        block_rows = rows                     # one grid step, zero extra launch cost
    else:
        block_rows = _MAX_BLOCK_ROWS          # multiple of 8; tile along rows only

    grid = (pl.cdiv(rows, block_rows),)
    out = pl.pallas_call(
        _copy_kernel,
        out_shape=jax.ShapeDtypeStruct((rows, cols), x.dtype),
        grid=grid,
        in_specs=[pl.BlockSpec((block_rows, cols), lambda i: (i, 0))],
        out_specs=pl.BlockSpec((block_rows, cols), lambda i: (i, 0)),
        compiler_params=pltpu.CompilerParams(
            dimension_semantics=("parallel",)),   # independent blocks; feeds
                                                  # both TCs on v7x, harmless
                                                  # (no-op) on v5e/v6e.
    )(mat)
    return out.reshape(orig_shape)


# ----------------------------------------------------------------------------
# Empty.forward semantics
# ----------------------------------------------------------------------------
def empty_forward(*args, **kwargs):
    """Mirror of torch `Empty.forward`: identity pass-through."""
    del kwargs
    if len(args) == 1:
        return _pallas_identity(args[0])
    if len(args) == 0:
        return None
    return tuple(_pallas_identity(a) for a in args)


if __name__ == "__main__":
    key = jax.random.PRNGKey(0)

    # Single-tensor case (the main path): batch=2, channels=4, spatial=16.
    x = jax.random.normal(key, (2, 4, 16, 16), jnp.float32)
    fwd = jax.jit(empty_forward)
    y = fwd(x)
    jax.block_until_ready(y)
    assert y.shape == x.shape and y.dtype == x.dtype
    assert bool(jnp.array_equal(y, x))

    # Zero-arg case: returns None.
    assert empty_forward() is None

    # Multi-arg case: returns the args (here: copied through the same kernel),
    # exercising both the lane-dense path (bf16, 8x128) and the odd-length
    # full-extent fallback (int32, 37 elements).
    a = jnp.ones((8, 128), jnp.bfloat16)
    b = jnp.arange(37, dtype=jnp.int32)
    ra, rb = empty_forward(a, b)
    jax.block_until_ready((ra, rb))
    assert bool(jnp.array_equal(ra, a)) and bool(jnp.array_equal(rb, b))
    assert ra.dtype == a.dtype and rb.dtype == b.dtype

    print("KERNEL_OK")
</pallas_src>

<mosaic_0001>
module attributes {stable_mosaic.version = 11 : i64} {
  func.func @_copy_kernel(%arg0: i32, %arg1: memref<16x128xf32, #tpu.memory_space<vmem>>, %arg2: memref<16x128xf32, #tpu.memory_space<vmem>>) attributes {dimension_semantics = [#tpu.dimension_semantics<parallel>], iteration_bounds = array<i64: 1>, scalar_prefetch = 0 : i64, scratch_operands = 0 : i64, tpu.core_type = #tpu.core_type<tc>, window_params = [{transform_indices = @transform_0, window_bounds = array<i64: 16, 128>}, {transform_indices = @transform_1, window_bounds = array<i64: 16, 128>}]} {
    %c0 = arith.constant 0 : index
    %c0_0 = arith.constant 0 : index
    %0 = vector.load %arg1[%c0, %c0_0] : memref<16x128xf32, #tpu.memory_space<vmem>>, vector<16x128xf32>
    %c0_1 = arith.constant 0 : index
    %c0_2 = arith.constant 0 : index
    %1 = vector.load %arg2[%c0_1, %c0_2] : memref<16x128xf32, #tpu.memory_space<vmem>>, vector<16x128xf32>
    tpu.vector_store %arg2[%c0_1, %c0_2], %0 {strides = array<i32>} : memref<16x128xf32, #tpu.memory_space<vmem>>, vector<16x128xf32>,
    return
  }
  func.func @transform_0(%arg0: i32) -> (i32, i32) {
    %c0_i32 = arith.constant 0 : i32
    %c0_i32_0 = arith.constant 0 : i32
    return %arg0, %c0_i32 : i32, i32
  }
  func.func @transform_1(%arg0: i32) -> (i32, i32) {
    %c0_i32 = arith.constant 0 : i32
    %c0_i32_0 = arith.constant 0 : i32
    return %arg0, %c0_i32 : i32, i32
  }
}

</mosaic_0001>

<bundles_post_ra>
// kernel: empty_forward.1
= control target key start
LH: loop header
LB: loop body
LE: loop exit
PB: predicated region body
PF: predicated region fallthrough
CT: control target
= control target key end

     0   :  { %s38_s0 = inlined_call_operand.vmem [shape: f32[16,128], index: 0, kind: input, shape index: {}]   ;;  %s39_s1 = inlined_call_operand.vmem [shape: f32[16,128], index: 1, kind: output, shape index: {}]  }
   0x1   :  { %v8_v0 = vld [vmem:[%s38_s0] sm:$0xff]  ;;  %v9_v1 = vld [vmem:[%s38_s0 + $0x8] sm:$0xff] }
   0x2   :  { %10 = vst [vmem:[%s39_s1] sm:$0xff] %v8_v0  ;;  %11 = vst [vmem:[%s39_s1 + $0x8] sm:$0xff] %v9_v1 }

</bundles_post_ra>
